<compile_context>
chip_gen: v5e
topology: v5e:2x2
jax: 0.10.0
libtpu: 0.0.40
codegen_flags: <defaults>
</compile_context>

<pallas_src>
import functools

import jax
import jax.numpy as jnp
from jax import lax
from jax.experimental import pallas as pl
from jax.experimental.pallas import tpu as pltpu

_LANE = 128
_SUBLANE = 8


def _round_up(v, m):
    return (v + m - 1) // m * m


# ---------------------------------------------------------------------------
# Fused kernel: all SAGEConv layers + ReLU + global max pool + lin1/ReLU/lin2
# ---------------------------------------------------------------------------
def _fused_sage_kernel(a_ref, deg_ref, x_in_ref, w_ref, b_ref,
                       w1_ref, b1_ref, w2_ref, b2_ref,
                       o_ref,
                       x_pp, feat, pool,
                       *, num_real_nodes, tile_m, tile_k, a_resident):
    # Grid: (layer, dst-node tile). The src reduction is an in-kernel loop.
    ell = pl.program_id(0)
    di = pl.program_id(1)
    n_layers = pl.num_programs(0)
    n_dst = pl.num_programs(1)

    n_pad, f_pad = x_in_ref.shape
    n_src = n_pad // tile_k          # static python int
    tm = tile_m

    dst_row = pl.multiple_of(di * tm, tm)

    # Layer-parity ping-pong: layer ell reads rows [rd, rd+n_pad) of x_pp and
    # writes rows [wr, wr+n_pad).
    rd = pl.multiple_of(lax.rem(ell, 2) * n_pad, tile_k)
    wr = pl.multiple_of(n_pad - rd, tile_k)

    # ---- one-time init: stage input features (bf16), clear running max ----
    @pl.when((ell == 0) & (di == 0))
    def _():
        x_pp[pl.ds(0, n_pad), :] = x_in_ref[...]
        # Pooled features come out of a ReLU (>= 0), so 0 is a valid identity
        # for the running max (also avoids -inf arithmetic).
        pool[...] = jnp.zeros_like(pool)

    # ---- mean aggregation: acc = sum_k A[dst_tile, k] @ X[k] ---------------
    # Accumulator stays in vregs (fori_loop carry), not VMEM.
    a_row0 = dst_row if a_resident else 0

    def body(s, acc):
        col = pl.multiple_of(s * tile_k, tile_k)
        a_blk = a_ref[pl.ds(a_row0, tm), pl.ds(col, tile_k)]            # bf16
        x_blk = x_pp[pl.ds(pl.multiple_of(rd + col, tile_k), tile_k), :]  # bf16
        return acc + jnp.dot(a_blk, x_blk, preferred_element_type=jnp.float32)

    agg = lax.fori_loop(0, n_src, body,
                        jnp.zeros((tm, f_pad), jnp.float32),
                        unroll=(n_src <= 8))

    # ---- finalize this dst tile: scale, project (bf16 MXU), ReLU, store ----
    deg_inv = deg_ref[pl.ds(dst_row, tm), :]                   # (tm, 1) f32
    x_self = x_pp[pl.ds(pl.multiple_of(rd + dst_row, tm), tm), :]  # (tm,f) bf16

    feat[:, :f_pad] = (agg * deg_inv).astype(jnp.bfloat16)     # scatter-mean
    feat[:, f_pad:] = x_self                                   # root/self path

    # Merged projection: [agg, x_self] @ [[W_l],[W_r]] + b_l, then ReLU.
    h = jnp.dot(feat[...], w_ref[...],
                preferred_element_type=jnp.float32) + b_ref[...]
    h = jnp.maximum(h, 0.0)
    # TODO(synk): dropout after ReLU is identity in eval mode (p inactive).
    x_pp[pl.ds(pl.multiple_of(wr + dst_row, tm), tm), :] = h.astype(jnp.bfloat16)

    # Global max pool fused into the last conv layer's epilogue.
    @pl.when(ell == n_layers - 1)
    def _():
        rows = lax.broadcasted_iota(jnp.int32, (tm, 1), 0) + dst_row
        hm = jnp.where(rows < num_real_nodes, h, 0.0)          # mask padded nodes
        pool[...] = jnp.maximum(pool[...],
                                jnp.max(hm, axis=0, keepdims=True))

    # Very last grid step: pooled -> lin1 -> ReLU -> lin2.
    @pl.when((ell == n_layers - 1) & (di == n_dst - 1))
    def _():
        pz = pool[...].astype(jnp.bfloat16)
        z = jnp.dot(pz, w1_ref[...],
                    preferred_element_type=jnp.float32) + b1_ref[...]
        z = jnp.maximum(z, 0.0)
        o_ref[...] = jnp.dot(z.astype(jnp.bfloat16), w2_ref[...],
                             preferred_element_type=jnp.float32) + b2_ref[...]


# ---------------------------------------------------------------------------
# VMEM accounting + tile / residency selection
# ---------------------------------------------------------------------------
def _vmem_footprint_bytes(n_pad, f_pad, tile_m, a_resident):
    BF, F32 = 2, 4
    a_rows = n_pad if a_resident else tile_m
    total = 0
    # Auto-pipelined inputs/outputs: 2 buffers each (constant-index operands
    # are still double-buffered by default; see Buffered(1) TODO above).
    total += 2 * a_rows * n_pad * BF                    # adjacency (bf16)
    total += 2 * n_pad * _LANE * F32                    # 1/deg (n_pad,1) lane-padded
    total += 2 * n_pad * f_pad * BF                     # x_in (bf16)
    total += 2 * 2 * f_pad * f_pad * BF                 # W_cat[l]
    total += 2 * _SUBLANE * f_pad * F32                 # b_cat[l]
    total += 2 * 2 * f_pad * f_pad * BF                 # lin1/lin2 weights
    total += 2 * 2 * _SUBLANE * f_pad * F32             # lin1/lin2 biases
    total += 2 * _SUBLANE * f_pad * F32                 # output block
    # Scratch (single-buffered, full kernel lifetime).
    total += 2 * n_pad * f_pad * BF                     # ping-pong activations
    total += tile_m * 2 * f_pad * BF                    # [agg | self] staging
    total += _SUBLANE * f_pad * F32                     # running max pool
    return total


def _vmem_budget_bytes():
    try:
        kind = jax.devices()[0].device_kind.lower()
    except Exception:
        return 40 << 20
    if "v7" in kind:
        return 44 << 20           # v7x: 64 MiB physical, leave headroom
    if "v5" in kind or "v6" in kind:
        return 96 << 20           # v5e/v6e: 128 MiB physical
    return 40 << 20


def choose_config(num_nodes, f_pad, budget_bytes):
    """Pick n_pad (padded UP to the tile), tile sizes and adjacency residency."""
    n128 = _round_up(num_nodes, _LANE)
    tile_m = _LANE if n128 <= _LANE else 256
    if n128 <= _LANE:
        tile_k = _LANE
    elif n128 <= 256:
        tile_k = 256
    else:
        tile_k = 512
    # Keep the fori-loop f32 accumulator at <= ~32 vregs.
    if tile_m * f_pad * 4 > 128 * 1024:
        tile_m = _LANE
    n_pad = _round_up(num_nodes, tile_k)      # tile_k is a multiple of tile_m
    a_resident = _vmem_footprint_bytes(n_pad, f_pad, tile_m, True) <= budget_bytes
    if not a_resident and _vmem_footprint_bytes(n_pad, f_pad, tile_m, False) > budget_bytes:
        tile_m = _LANE
        # TODO(synk): for very large sparse graphs switch to a CSR / sorted-edge
        # layout consumed via scalar prefetch + DMA gather instead of dense A.
    return n_pad, tile_m, tile_k, a_resident


@functools.partial(jax.jit,
                   static_argnames=("num_real_nodes", "tile_m", "tile_k",
                                    "a_resident"))
def fused_forward(a_bf16, deg_inv, x_pad, w_cat, b_cat, w1, b1, w2, b2,
                  *, num_real_nodes, tile_m, tile_k, a_resident):
    n_layers = w_cat.shape[0]
    n_pad, f_pad = x_pad.shape
    grid = (n_layers, n_pad // tile_m)

    if a_resident:
        # Adjacency stays resident in VMEM for the whole grid (DMA'd once).
        a_spec = pl.BlockSpec((n_pad, n_pad), lambda l, i: (0, 0))
    else:
        # Stream one dst row-block per dst tile (full src extent per block).
        a_spec = pl.BlockSpec((tile_m, n_pad), lambda l, i: (i, 0))

    kernel = functools.partial(_fused_sage_kernel,
                               num_real_nodes=num_real_nodes,
                               tile_m=tile_m, tile_k=tile_k,
                               a_resident=a_resident)

    footprint = _vmem_footprint_bytes(n_pad, f_pad, tile_m, a_resident)
    vmem_limit = max(footprint + footprint // 4 + (2 << 20), 16 << 20)

    out = pl.pallas_call(
        kernel,
        out_shape=jax.ShapeDtypeStruct((1, f_pad), jnp.float32),
        grid_spec=pltpu.PrefetchScalarGridSpec(
            num_scalar_prefetch=0,
            grid=grid,
            in_specs=[
                a_spec,                                                     # A
                pl.BlockSpec((n_pad, 1), lambda l, i: (0, 0)),              # 1/deg
                pl.BlockSpec((n_pad, f_pad), lambda l, i: (0, 0)),          # x_in
                pl.BlockSpec((None, 2 * f_pad, f_pad),
                             lambda l, i: (l, 0, 0)),                       # W_cat[l]
                pl.BlockSpec((None, 1, f_pad), lambda l, i: (l, 0, 0)),     # b_cat[l]
                pl.BlockSpec((f_pad, f_pad), lambda l, i: (0, 0)),          # lin1 W
                pl.BlockSpec((1, f_pad), lambda l, i: (0, 0)),              # lin1 b
                pl.BlockSpec((f_pad, f_pad), lambda l, i: (0, 0)),          # lin2 W
                pl.BlockSpec((1, f_pad), lambda l, i: (0, 0)),              # lin2 b
            ],
            out_specs=pl.BlockSpec((1, f_pad), lambda l, i: (0, 0)),
            scratch_shapes=[
                pltpu.VMEM((2 * n_pad, f_pad), jnp.bfloat16),   # ping-pong acts
                pltpu.VMEM((tile_m, 2 * f_pad), jnp.bfloat16),  # [agg | self]
                pltpu.VMEM((1, f_pad), jnp.float32),            # running max pool
            ]),
        compiler_params=pltpu.CompilerParams(
            dimension_semantics=("arbitrary", "arbitrary"),
            vmem_limit_bytes=int(vmem_limit)),
    )(a_bf16, deg_inv, x_pad, w_cat, b_cat, w1, b1, w2, b2)
    return out[0, 0]  # .squeeze()


# ---------------------------------------------------------------------------
# Host-side (one-time) preprocessing: graph operands, padded/stacked params
# ---------------------------------------------------------------------------
def build_graph_operands(edge_index, n_pad):
    """Dense multiplicity adjacency (exact small ints, bf16) + f32 1/in-degree.

    A[i, j] = #edges j -> i (duplicates counted, matching PyG scatter-mean);
    the 1/deg normalisation is a per-row f32 scale applied in-kernel so the
    N^2 operand stays exactly representable in bf16 (exact up to 256 parallel
    edges per pair).
    """
    src = edge_index[0]
    dst = edge_index[1]
    a = jnp.zeros((n_pad, n_pad), jnp.float32).at[dst, src].add(1.0)
    deg = jnp.sum(a, axis=1, keepdims=True)
    deg_inv = 1.0 / jnp.clip(deg, 1.0, None)
    return a.astype(jnp.bfloat16), deg_inv


def pad_features(x, n_pad, f_pad):
    n, f = x.shape
    out = jnp.zeros((n_pad, f_pad), jnp.float32).at[:n, :f].set(x)
    return out.astype(jnp.bfloat16)


def pack_parameters(params, n_layers, f_pad):
    """Zero-pad all weights to lane-dense (multiples of 128) shapes, stack the
    conv layers, and cast weights to bf16 for the MXU fast path (biases f32)."""
    w_cat = jnp.zeros((n_layers, 2 * f_pad, f_pad), jnp.float32)
    b_cat = jnp.zeros((n_layers, 1, f_pad), jnp.float32)
    for layer in range(n_layers):
        p = params[f"conv{layer + 1}"]
        fin, fout = p["w_l"].shape
        w_cat = w_cat.at[layer, :fin, :fout].set(p["w_l"])                # agg path
        w_cat = w_cat.at[layer, f_pad:f_pad + fin, :fout].set(p["w_r"])   # self path
        b_cat = b_cat.at[layer, 0, :fout].set(p["b_l"])
    h_in, h_mid = params["lin1"]["w"].shape
    w1 = jnp.zeros((f_pad, f_pad), jnp.float32).at[:h_in, :h_mid].set(params["lin1"]["w"])
    b1 = jnp.zeros((1, f_pad), jnp.float32).at[0, :h_mid].set(params["lin1"]["b"])
    w2 = jnp.zeros((f_pad, f_pad), jnp.float32).at[:h_mid, :1].set(params["lin2"]["w"])
    b2 = jnp.zeros((1, f_pad), jnp.float32).at[0, :1].set(params["lin2"]["b"])
    return (w_cat.astype(jnp.bfloat16), b_cat,
            w1.astype(jnp.bfloat16), b1,
            w2.astype(jnp.bfloat16), b2)


# ---------------------------------------------------------------------------
# Parameter init + pure-JAX f32 reference (for a tolerance check)
# ---------------------------------------------------------------------------
def _glorot(key, shape):
    fan_in, fan_out = shape
    limit = (6.0 / (fan_in + fan_out)) ** 0.5
    return jax.random.uniform(key, shape, jnp.float32, -limit, limit)


def init_params(key, num_features, hidden, number_conv_layers, num_classes):
    if number_conv_layers > 4:
        # conv5 outputs num_classes but lin1 expects `hidden` inputs; the
        # original module only works when the two coincide.
        assert num_classes == hidden, "conv5 out dim must equal hidden for lin1"
    params = {}
    dims_in = [num_features] + [hidden] * 4
    dims_out = [hidden, hidden, hidden, hidden, num_classes]
    for layer in range(number_conv_layers):
        key, k1, k2 = jax.random.split(key, 3)
        fin, fout = dims_in[layer], dims_out[layer]
        params[f"conv{layer + 1}"] = {
            "w_l": _glorot(k1, (fin, fout)),
            "w_r": _glorot(k2, (fin, fout)),
            "b_l": jnp.zeros((fout,), jnp.float32),
        }
    key, k1, k2 = jax.random.split(key, 3)
    params["lin1"] = {"w": _glorot(k1, (hidden, hidden // 2)),
                      "b": jnp.zeros((hidden // 2,), jnp.float32)}
    params["lin2"] = {"w": _glorot(k2, (hidden // 2, 1)),
                      "b": jnp.zeros((1,), jnp.float32)}
    return params


def reference_forward(params, x, edge_index, num_nodes, number_conv_layers):
    src, dst = edge_index[0], edge_index[1]
    a = jnp.zeros((num_nodes, num_nodes), jnp.float32).at[dst, src].add(1.0)
    deg = jnp.clip(jnp.sum(a, axis=1, keepdims=True), 1.0, None)
    a = a / deg
    h = x
    for layer in range(number_conv_layers):
        p = params[f"conv{layer + 1}"]
        h = jnp.maximum((a @ h) @ p["w_l"] + h @ p["w_r"] + p["b_l"], 0.0)
    pooled = jnp.max(h, axis=0)                    # single-graph global_max_pool
    z = jnp.maximum(pooled @ params["lin1"]["w"] + params["lin1"]["b"], 0.0)
    y = z @ params["lin2"]["w"] + params["lin2"]["b"]
    return y.squeeze()


if __name__ == "__main__":
    # Small config implied by the module.
    # TODO(synk): at this size the kernel is fixed-overhead bound; batching
    # multiple graphs per pallas_call (extra graph grid axis) is the next win.
    NUM_NODES = 64
    NUM_FEATURES = 16
    HIDDEN_CHANNELS = 32
    NUMBER_CONV_LAYERS = 3
    NUM_CLASSES = HIDDEN_CHANNELS  # only relevant when number_conv_layers > 4
    NUM_EDGES = 256

    key = jax.random.PRNGKey(0)
    key, kx, ke, kp = jax.random.split(key, 4)
    x = jax.random.normal(kx, (NUM_NODES, NUM_FEATURES), jnp.float32)
    edge_index = jax.random.randint(ke, (2, NUM_EDGES), 0, NUM_NODES, jnp.int32)
    params = init_params(kp, NUM_FEATURES, HIDDEN_CHANNELS,
                         NUMBER_CONV_LAYERS, NUM_CLASSES)

    # -- one-time preprocessing, hoisted out of the jitted forward ----------
    feat_dims = [NUM_FEATURES, HIDDEN_CHANNELS]
    if NUMBER_CONV_LAYERS > 4:
        feat_dims.append(NUM_CLASSES)
    f_pad = _round_up(max(feat_dims), _LANE)
    n_pad, tile_m, tile_k, a_resident = choose_config(
        NUM_NODES, f_pad, _vmem_budget_bytes())

    a_bf16, deg_inv = build_graph_operands(edge_index, n_pad)
    x_pad = pad_features(x, n_pad, f_pad)
    w_cat, b_cat, w1, b1, w2, b2 = pack_parameters(params, NUMBER_CONV_LAYERS, f_pad)

    out = fused_forward(a_bf16, deg_inv, x_pad, w_cat, b_cat, w1, b1, w2, b2,
                        num_real_nodes=NUM_NODES, tile_m=tile_m, tile_k=tile_k,
                        a_resident=a_resident)
    out = jax.block_until_ready(out)
    assert out.shape == (), f"expected scalar output, got {out.shape}"

    # -- correctness check against a pure-JAX f32 reference -----------------
    ref = jax.block_until_ready(
        reference_forward(params, x, edge_index, NUM_NODES, NUMBER_CONV_LAYERS))
    err = abs(float(out) - float(ref))
    tol = 8e-2 + 5e-2 * abs(float(ref))   # loose: bf16 activations/weights
    assert bool(jnp.isfinite(out)), "non-finite kernel output"
    assert err <= tol, f"mismatch: pallas={float(out)} ref={float(ref)} err={err}"

    print("KERNEL_OK")
</pallas_src>

<mosaic_0001>
module attributes {stable_mosaic.version = 11 : i64} {
  func.func @_fused_sage_kernel(%arg0: i32, %arg1: i32, %arg2: memref<128x128xbf16, #tpu.memory_space<vmem>>, %arg3: memref<128x1xf32, #tpu.memory_space<vmem>>, %arg4: memref<128x128xbf16, #tpu.memory_space<vmem>>, %arg5: memref<1x256x128xbf16, #tpu.memory_space<vmem>>, %arg6: memref<1x1x128xf32, #tpu.memory_space<vmem>>, %arg7: memref<128x128xbf16, #tpu.memory_space<vmem>>, %arg8: memref<1x128xf32, #tpu.memory_space<vmem>>, %arg9: memref<128x128xbf16, #tpu.memory_space<vmem>>, %arg10: memref<1x128xf32, #tpu.memory_space<vmem>>, %arg11: memref<1x128xf32, #tpu.memory_space<vmem>>, %arg12: memref<256x128xbf16, #tpu.memory_space<vmem>>, %arg13: memref<128x256xbf16, #tpu.memory_space<vmem>>, %arg14: memref<1x128xf32, #tpu.memory_space<vmem>>) attributes {dimension_semantics = [#tpu.dimension_semantics<arbitrary>, #tpu.dimension_semantics<arbitrary>], iteration_bounds = array<i64: 3, 1>, scalar_prefetch = 0 : i64, scratch_operands = 3 : i64, tpu.core_type = #tpu.core_type<tc>, window_params = [{pipeline_mode = #tpu.pipeline_mode<synchronous>, transform_indices = @transform_0, window_bounds = array<i64: 128, 128>}, {pipeline_mode = #tpu.pipeline_mode<synchronous>, transform_indices = @transform_1, window_bounds = array<i64: 128, 1>}, {pipeline_mode = #tpu.pipeline_mode<synchronous>, transform_indices = @transform_2, window_bounds = array<i64: 128, 128>}, {transform_indices = @transform_3, window_bounds = array<i64: 1, 256, 128>}, {transform_indices = @transform_4, window_bounds = array<i64: 1, 1, 128>}, {pipeline_mode = #tpu.pipeline_mode<synchronous>, transform_indices = @transform_5, window_bounds = array<i64: 128, 128>}, {pipeline_mode = #tpu.pipeline_mode<synchronous>, transform_indices = @transform_6, window_bounds = array<i64: 1, 128>}, {pipeline_mode = #tpu.pipeline_mode<synchronous>, transform_indices = @transform_7, window_bounds = array<i64: 128, 128>}, {pipeline_mode = #tpu.pipeline_mode<synchronous>, transform_indices = @transform_8, window_bounds = array<i64: 1, 128>}, {pipeline_mode = #tpu.pipeline_mode<synchronous>, transform_indices = @transform_9, window_bounds = array<i64: 1, 128>}]} {
    %c128_i32 = arith.constant 128 : i32
    %0 = arith.muli %arg1, %c128_i32 : i32
    %1 = tpu.assume_multiple %0, 128 : i32
    %c2_i32 = arith.constant 2 : i32
    %2 = arith.remsi %arg0, %c2_i32 : i32
    %c128_i32_0 = arith.constant 128 : i32
    %3 = arith.muli %2, %c128_i32_0 : i32
    %4 = tpu.assume_multiple %3, 128 : i32
    %c128_i32_1 = arith.constant 128 : i32
    %5 = arith.subi %c128_i32_1, %4 : i32
    %6 = tpu.assume_multiple %5, 128 : i32
    %c0_i32 = arith.constant 0 : i32
    %7 = arith.cmpi eq, %arg0, %c0_i32 : i32
    %c0_i32_2 = arith.constant 0 : i32
    %8 = arith.cmpi eq, %arg1, %c0_i32_2 : i32
    %9 = arith.andi %7, %8 : i1
    %10 = arith.extui %9 : i1 to i32
    %c0_i32_3 = arith.constant 0 : i32
    %11 = arith.cmpi ne, %10, %c0_i32_3 : i32
    scf.if %11 {
      %c0_28 = arith.constant 0 : index
      %c0_29 = arith.constant 0 : index
      %58 = vector.load %arg4[%c0_28, %c0_29] : memref<128x128xbf16, #tpu.memory_space<vmem>>, vector<128x128xbf16>
      %c0_30 = arith.constant 0 : index
      %c0_31 = arith.constant 0 : index
      %59 = vector.load %arg12[%c0_30, %c0_31] : memref<256x128xbf16, #tpu.memory_space<vmem>>, vector<128x128xbf16>
      tpu.vector_store %arg12[%c0_30, %c0_31], %58 {strides = array<i32>} : memref<256x128xbf16, #tpu.memory_space<vmem>>, vector<128x128xbf16>,
      %cst_32 = arith.constant 0.000000e+00 : f32
      %60 = vector.broadcast %cst_32 : f32 to vector<1x128xf32>
      %c0_33 = arith.constant 0 : index
      %c0_34 = arith.constant 0 : index
      %61 = vector.load %arg14[%c0_33, %c0_34] : memref<1x128xf32, #tpu.memory_space<vmem>>, vector<1x128xf32>
      tpu.vector_store %arg14[%c0_33, %c0_34], %60 {strides = array<i32>} : memref<1x128xf32, #tpu.memory_space<vmem>>, vector<1x128xf32>,
    } else {
    }
    %cst = arith.constant 0.000000e+00 : f32
    %12 = vector.broadcast %cst : f32 to vector<128x128xf32>
    %c0_i32_4 = arith.constant 0 : i32
    %c128_i32_5 = arith.constant 128 : i32
    %13 = arith.muli %c0_i32_4, %c128_i32_5 : i32
    %14 = tpu.assume_multiple %13, 128 : i32
    %15 = arith.index_cast %1 : i32 to index
    %16 = arith.index_cast %14 : i32 to index
    %17 = vector.load %arg2[%15, %16] : memref<128x128xbf16, #tpu.memory_space<vmem>>, vector<128x128xbf16>
    %18 = arith.addi %4, %14 : i32
    %19 = tpu.assume_multiple %18, 128 : i32
    %20 = arith.index_cast %19 : i32 to index
    %c0 = arith.constant 0 : index
    %21 = vector.load %arg12[%20, %c0] : memref<256x128xbf16, #tpu.memory_space<vmem>>, vector<128x128xbf16>
    %cst_6 = arith.constant dense<0.000000e+00> : vector<128x128xf32>
    %22 = tpu.matmul %17, %21, %cst_6 {dimension_numbers = #tpu.dot_dimension_numbers<[1], [0], [0], [1], [0, 0, 1, 1], [], []>} : vector<128x128xbf16>, vector<128x128xbf16>, vector<128x128xf32> -> vector<128x128xf32>
    %23 = arith.addf %12, %22 : vector<128x128xf32>
    %c1_i32 = arith.constant 1 : i32
    %24 = arith.index_cast %1 : i32 to index
    %c0_7 = arith.constant 0 : index
    %25 = vector.load %arg3[%24, %c0_7] : memref<128x1xf32, #tpu.memory_space<vmem>>, vector<128x1xf32>
    %26 = arith.addi %4, %1 : i32
    %27 = tpu.assume_multiple %26, 128 : i32
    %28 = arith.index_cast %27 : i32 to index
    %c0_8 = arith.constant 0 : index
    %29 = vector.load %arg12[%28, %c0_8] : memref<256x128xbf16, #tpu.memory_space<vmem>>, vector<128x128xbf16>
    %30 = vector.broadcast %25 : vector<128x1xf32> to vector<128x128xf32>
    %31 = arith.mulf %23, %30 : vector<128x128xf32>
    %32 = arith.truncf %31 : vector<128x128xf32> to vector<128x128xbf16>
    %c0_9 = arith.constant 0 : index
    %c0_10 = arith.constant 0 : index
    %33 = vector.load %arg13[%c0_9, %c0_10] : memref<128x256xbf16, #tpu.memory_space<vmem>>, vector<128x128xbf16>
    tpu.vector_store %arg13[%c0_9, %c0_10], %32 {strides = array<i32>} : memref<128x256xbf16, #tpu.memory_space<vmem>>, vector<128x128xbf16>,
    %c0_11 = arith.constant 0 : index
    %c128 = arith.constant 128 : index
    %34 = vector.load %arg13[%c0_11, %c128] : memref<128x256xbf16, #tpu.memory_space<vmem>>, vector<128x128xbf16>
    tpu.vector_store %arg13[%c0_11, %c128], %29 {strides = array<i32>} : memref<128x256xbf16, #tpu.memory_space<vmem>>, vector<128x128xbf16>,
    %c0_12 = arith.constant 0 : index
    %c0_13 = arith.constant 0 : index
    %35 = vector.load %arg13[%c0_12, %c0_13] : memref<128x256xbf16, #tpu.memory_space<vmem>>, vector<128x256xbf16>
    %c0_14 = arith.constant 0 : index
    %c0_15 = arith.constant 0 : index
    %c0_16 = arith.constant 0 : index
    %36 = vector.load %arg5[%c0_14, %c0_15, %c0_16] : memref<1x256x128xbf16, #tpu.memory_space<vmem>>, vector<1x256x128xbf16>
    %37 = vector.shape_cast %36 : vector<1x256x128xbf16> to vector<256x128xbf16>
    %cst_17 = arith.constant dense<0.000000e+00> : vector<128x128xf32>
    %38 = tpu.matmul %35, %37, %cst_17 {dimension_numbers = #tpu.dot_dimension_numbers<[1], [0], [0], [1], [0, 0, 1, 1], [], []>} : vector<128x256xbf16>, vector<256x128xbf16>, vector<128x128xf32> -> vector<128x128xf32>
    %c0_18 = arith.constant 0 : index
    %c0_19 = arith.constant 0 : index
    %c0_20 = arith.constant 0 : index
    %39 = vector.load %arg6[%c0_18, %c0_19, %c0_20] : memref<1x1x128xf32, #tpu.memory_space<vmem>>, vector<1x1x128xf32>
    %40 = vector.shape_cast %39 : vector<1x1x128xf32> to vector<1x128xf32>
    %41 = vector.broadcast %40 : vector<1x128xf32> to vector<128x128xf32>
    %42 = arith.addf %38, %41 : vector<128x128xf32>
    %cst_21 = arith.constant 0.000000e+00 : f32
    %43 = vector.broadcast %cst_21 : f32 to vector<128x128xf32>
    %44 = arith.maximumf %42, %43 : vector<128x128xf32>
    %45 = arith.truncf %44 : vector<128x128xf32> to vector<128x128xbf16>
    %46 = arith.addi %6, %1 : i32
    %47 = tpu.assume_multiple %46, 128 : i32
    %48 = arith.index_cast %47 : i32 to index
    %c0_22 = arith.constant 0 : index
    %49 = vector.load %arg12[%48, %c0_22] : memref<256x128xbf16, #tpu.memory_space<vmem>>, vector<128x128xbf16>
    tpu.vector_store %arg12[%48, %c0_22], %45 {strides = array<i32>} : memref<256x128xbf16, #tpu.memory_space<vmem>>, vector<128x128xbf16>,
    %c2_i32_23 = arith.constant 2 : i32
    %50 = arith.cmpi eq, %arg0, %c2_i32_23 : i32
    %51 = arith.extui %50 : i1 to i32
    %c0_i32_24 = arith.constant 0 : i32
    %52 = arith.cmpi ne, %51, %c0_i32_24 : i32
    scf.if %52 {
      %58 = tpu.iota {dimensions = array<i32: 0>} : vector<128x1xi32>
      %59 = vector.broadcast %1 : i32 to vector<128x1xi32>
      %60 = arith.addi %58, %59 : vector<128x1xi32>
      %c64_i32 = arith.constant 64 : i32
      %61 = vector.broadcast %c64_i32 : i32 to vector<128x1xi32>
      %62 = arith.cmpi slt, %60, %61 : vector<128x1xi32>
      %cst_28 = arith.constant 0.000000e+00 : f32
      %63 = vector.shape_cast %62 : vector<128x1xi1> to vector<128x1xi1>
      %64 = vector.broadcast %63 : vector<128x1xi1> to vector<128x128xi1>
      %65 = vector.broadcast %cst_28 : f32 to vector<128x128xf32>
      %66 = arith.select %64, %44, %65 : vector<128x128xi1>, vector<128x128xf32>
      %c0_29 = arith.constant 0 : index
      %c0_30 = arith.constant 0 : index
      %67 = vector.load %arg14[%c0_29, %c0_30] : memref<1x128xf32, #tpu.memory_space<vmem>>, vector<1x128xf32>
      %cst_31 = arith.constant dense<0xFF800000> : vector<128xf32>
      %68 = vector.multi_reduction <maximumf>, %66, %cst_31 [0] : vector<128x128xf32> to vector<128xf32>
      %69 = vector.shape_cast %68 : vector<128xf32> to vector<1x128xf32>
      %70 = arith.maximumf %67, %69 : vector<1x128xf32>
      %c0_32 = arith.constant 0 : index
      %c0_33 = arith.constant 0 : index
      %71 = vector.load %arg14[%c0_32, %c0_33] : memref<1x128xf32, #tpu.memory_space<vmem>>, vector<1x128xf32>
      tpu.vector_store %arg14[%c0_32, %c0_33], %70 {strides = array<i32>} : memref<1x128xf32, #tpu.memory_space<vmem>>, vector<1x128xf32>,
    } else {
    }
    %c2_i32_25 = arith.constant 2 : i32
    %53 = arith.cmpi eq, %arg0, %c2_i32_25 : i32
    %c0_i32_26 = arith.constant 0 : i32
    %54 = arith.cmpi eq, %arg1, %c0_i32_26 : i32
    %55 = arith.andi %53, %54 : i1
    %56 = arith.extui %55 : i1 to i32
    %c0_i32_27 = arith.constant 0 : i32
    %57 = arith.cmpi ne, %56, %c0_i32_27 : i32
    scf.if %57 {
      %c0_28 = arith.constant 0 : index
      %c0_29 = arith.constant 0 : index
      %58 = vector.load %arg14[%c0_28, %c0_29] : memref<1x128xf32, #tpu.memory_space<vmem>>, vector<1x128xf32>
      %59 = arith.truncf %58 : vector<1x128xf32> to vector<1x128xbf16>
      %c0_30 = arith.constant 0 : index
      %c0_31 = arith.constant 0 : index
      %60 = vector.load %arg7[%c0_30, %c0_31] : memref<128x128xbf16, #tpu.memory_space<vmem>>, vector<128x128xbf16>
      %cst_32 = arith.constant dense<0.000000e+00> : vector<1x128xf32>
      %61 = tpu.matmul %59, %60, %cst_32 {dimension_numbers = #tpu.dot_dimension_numbers<[1], [0], [0], [1], [0, 0, 1, 1], [], []>} : vector<1x128xbf16>, vector<128x128xbf16>, vector<1x128xf32> -> vector<1x128xf32>
      %c0_33 = arith.constant 0 : index
      %c0_34 = arith.constant 0 : index
      %62 = vector.load %arg8[%c0_33, %c0_34] : memref<1x128xf32, #tpu.memory_space<vmem>>, vector<1x128xf32>
      %63 = arith.addf %61, %62 : vector<1x128xf32>
      %cst_35 = arith.constant 0.000000e+00 : f32
      %64 = vector.broadcast %cst_35 : f32 to vector<1x128xf32>
      %65 = arith.maximumf %63, %64 : vector<1x128xf32>
      %66 = arith.truncf %65 : vector<1x128xf32> to vector<1x128xbf16>
      %c0_36 = arith.constant 0 : index
      %c0_37 = arith.constant 0 : index
      %67 = vector.load %arg9[%c0_36, %c0_37] : memref<128x128xbf16, #tpu.memory_space<vmem>>, vector<128x128xbf16>
      %cst_38 = arith.constant dense<0.000000e+00> : vector<1x128xf32>
      %68 = tpu.matmul %66, %67, %cst_38 {dimension_numbers = #tpu.dot_dimension_numbers<[1], [0], [0], [1], [0, 0, 1, 1], [], []>} : vector<1x128xbf16>, vector<128x128xbf16>, vector<1x128xf32> -> vector<1x128xf32>
      %c0_39 = arith.constant 0 : index
      %c0_40 = arith.constant 0 : index
      %69 = vector.load %arg10[%c0_39, %c0_40] : memref<1x128xf32, #tpu.memory_space<vmem>>, vector<1x128xf32>
      %70 = arith.addf %68, %69 : vector<1x128xf32>
      %c0_41 = arith.constant 0 : index
      %c0_42 = arith.constant 0 : index
      %71 = vector.load %arg11[%c0_41, %c0_42] : memref<1x128xf32, #tpu.memory_space<vmem>>, vector<1x128xf32>
      tpu.vector_store %arg11[%c0_41, %c0_42], %70 {strides = array<i32>} : memref<1x128xf32, #tpu.memory_space<vmem>>, vector<1x128xf32>,
    } else {
    }
    return
  }
  func.func @transform_0(%arg0: i32, %arg1: i32) -> (i32, i32) {
    %c0_i32 = arith.constant 0 : i32
    %c0_i32_0 = arith.constant 0 : i32
    %c0_i32_1 = arith.constant 0 : i32
    return %c0_i32, %c0_i32_0 : i32, i32
  }
  func.func @transform_1(%arg0: i32, %arg1: i32) -> (i32, i32) {
    %c0_i32 = arith.constant 0 : i32
    %c0_i32_0 = arith.constant 0 : i32
    %c0_i32_1 = arith.constant 0 : i32
    return %c0_i32, %c0_i32_0 : i32, i32
  }
  func.func @transform_2(%arg0: i32, %arg1: i32) -> (i32, i32) {
    %c0_i32 = arith.constant 0 : i32
    %c0_i32_0 = arith.constant 0 : i32
    %c0_i32_1 = arith.constant 0 : i32
    return %c0_i32, %c0_i32_0 : i32, i32
  }
  func.func @transform_3(%arg0: i32, %arg1: i32) -> (i32, i32, i32) {
    %c0_i32 = arith.constant 0 : i32
    %c0_i32_0 = arith.constant 0 : i32
    %c0_i32_1 = arith.constant 0 : i32
    return %arg0, %c0_i32, %c0_i32_0 : i32, i32, i32
  }
  func.func @transform_4(%arg0: i32, %arg1: i32) -> (i32, i32, i32) {
    %c0_i32 = arith.constant 0 : i32
    %c0_i32_0 = arith.constant 0 : i32
    %c0_i32_1 = arith.constant 0 : i32
    return %arg0, %c0_i32, %c0_i32_0 : i32, i32, i32
  }
  func.func @transform_5(%arg0: i32, %arg1: i32) -> (i32, i32) {
    %c0_i32 = arith.constant 0 : i32
    %c0_i32_0 = arith.constant 0 : i32
    %c0_i32_1 = arith.constant 0 : i32
    return %c0_i32, %c0_i32_0 : i32, i32
  }
  func.func @transform_6(%arg0: i32, %arg1: i32) -> (i32, i32) {
    %c0_i32 = arith.constant 0 : i32
    %c0_i32_0 = arith.constant 0 : i32
    %c0_i32_1 = arith.constant 0 : i32
    return %c0_i32, %c0_i32_0 : i32, i32
  }
  func.func @transform_7(%arg0: i32, %arg1: i32) -> (i32, i32) {
    %c0_i32 = arith.constant 0 : i32
    %c0_i32_0 = arith.constant 0 : i32
    %c0_i32_1 = arith.constant 0 : i32
    return %c0_i32, %c0_i32_0 : i32, i32
  }
  func.func @transform_8(%arg0: i32, %arg1: i32) -> (i32, i32) {
    %c0_i32 = arith.constant 0 : i32
    %c0_i32_0 = arith.constant 0 : i32
    %c0_i32_1 = arith.constant 0 : i32
    return %c0_i32, %c0_i32_0 : i32, i32
  }
  func.func @transform_9(%arg0: i32, %arg1: i32) -> (i32, i32) {
    %c0_i32 = arith.constant 0 : i32
    %c0_i32_0 = arith.constant 0 : i32
    %c0_i32_1 = arith.constant 0 : i32
    return %c0_i32, %c0_i32_0 : i32, i32
  }
}

</mosaic_0001>

<bundles_post_ra>
// kernel: fused_forward.1
= control target key start
LH: loop header
LB: loop body
LE: loop exit
PB: predicated region body
PF: predicated region fallthrough
CT: control target
= control target key end

     0   :  { %s2704_s0 = inlined_call_operand.vmem [shape: bf16[128,128], index: 0, kind: input, shape index: {}]   ;;  %s2705_s1 = inlined_call_operand.vmem [shape: f32[128,1], index: 1, kind: input, shape index: {}]   ;;  %s2706_s2 = inlined_call_operand.vmem [shape: bf16[128,128], index: 2, kind: input, shape index: {}]   ;;  %s2707_s3 = inlined_call_operand.hbm [shape: bf16[3,256,128], index: 3, kind: input, shape index: {}]   ;;  %s2708_s4 = inlined_call_operand.vmem [shape: f32[3,1,128], index: 4, kind: input, shape index: {}]   ;;  %s2709_s5 = inlined_call_operand.hbm [shape: bf16[128,128], index: 5, kind: input, shape index: {}]   ;;  %s2710_s6 = inlined_call_operand.vmem [shape: f32[1,128], index: 6, kind: input, shape index: {}]   ;;  %s2711_s7 = inlined_call_operand.hbm [shape: bf16[128,128], index: 7, kind: input, shape index: {}]   ;;  %s2712_s8 = inlined_call_operand.vmem [shape: f32[1,128], index: 8, kind: input, shape index: {}]   ;;  %s2713_s9 = inlined_call_operand.hbm [shape: f32[1,128], index: 9, kind: output, shape index: {}]  }
   0x1   :  { %2718 = sst [smem:[#allocation16_spill]] %s2709_s5 }
   0x2   :  { %2719 = sst [smem:[#allocation17_spill]] %s2711_s7 }
   0x3   :  { %2720 = sst [smem:[#allocation18_spill]] %s2713_s9 }
   0x4   :  { %14 = vsyncpa [#allocation6], 0 }
   0x5   :  { %16 = vsyncpa [#allocation6 + $0x1], 0 }
   0x6   :  { %17 = vsyncpa [#allocation9], 0 }
   0x7   :  { %18 = vsyncpa [#allocation7], 0  ;;  %s2337_s30 = smov 0   ;;  %s2339_s10 = smov 0  }
   0x8   :  { %s2341_s11 = smov 0   ;;  %s2343_s12 = smov 0  }
   0x9   :  { %s2345_s13 = smov 0   ;;  %s2347_s14 = smov 0  }
   0xa LB: > { %s2714_s15 = sadd.s32 4294967295, %s2278_s14   ;;  %p119_p0 = scmp.ne.s32.totalorder %s2262_s10, %s2258_s30  ;;  %s2278_s14 = sphi %s2347_s14, %s24_s14   ;;  %s2274_s13 = sphi %s2345_s13, %s2737_s13   ;;  %s2270_s12 = sphi %s2343_s12, %s2736_s12   ;;  %s2266_s11 = sphi %s2341_s11, %s2735_s11   ;;  %s2262_s10 = sphi %s2339_s10, %s2734_s10   ;;  %s2258_s30 = sphi %s2337_s30, %s2733_s30  }
   0xb   : > { %p2369_p1 = scmp.eq.s32.totalorder %s2714_s15, 0  ;;  %p1594_p2 = scmp.ge.s32.totalorder %s2278_s14, 1 }
   0xc   : > { %p261_p3 = scmp.lt.s32.totalorder %s2278_s14, 4  ;;  %s2723_s5 = sld [smem:[#allocation16_spill]] }
   0xd   : > { %p2377_p4 = por %p2369_p1, %p119_p0  ;;  %s2280_s22 = smov [#allocation8]  }
   0xe   : > { %p2384_p5 = pnand %p1594_p2, %p261_p3  ;;  %s283_s23 = sshll.u32 %s2280_s22, 4  ;;  %s284_s23 = int_to_ptr.vmem [resolvable:$true] %s283_s23 }
   0xf   : > { %s2725_s7 = sld [smem:[#allocation17_spill]]  ;;  %s2715_s27 = smov 64  }
  0x10   : > { %p2025_p6 = pneg %p2384_p5  ;;  %s2716_s28 = smov 4  }
  0x11   : > { %s2283_s29 = smov [#allocation10]   ;;  %s36_s18 = sadd.s32 1, %s2274_s13 }
  0x12   : > { %s281_s20 = sshll.u32 %s2723_s5, 4  ;;  %p2026_p7 = pnand %p2025_p6, %p2369_p1  ;;  %s282_s20 = int_to_ptr.hbm [resolvable:$true] %s281_s20 }
  0x13   : > { %s300_s30 = sshll.u32 %s2283_s29, 4  ;;  %s106_s19 = sadd.s32 1, %s2266_s11  ;;  %s301_s30 = int_to_ptr.vmem [resolvable:$true] %s300_s30 }
  0x14   : > { %2028 = dma.hbm_to_vmem [thread:$0]  (!%p2026_p7), %s282_s20, 1024, %s284_s23, [#allocation9], %s2715_s27, %s2715_s27, %s2716_s28  }
  0x15   : > { %s298_s26 = sshll.u32 %s2725_s7, 4  ;;  %p38_p8 = scmp.ge.s32.totalorder %s36_s18, 3  ;;  %s299_s26 = int_to_ptr.hbm [resolvable:$true] %s298_s26 }
  0x16   : > { %2031 = dma.hbm_to_vmem [thread:$0]  (!%p2026_p7), %s299_s26, 1024, %s301_s30, [#allocation9], %s2715_s27, %s2715_s27, %s2716_s28  }
  0x17   : > { %p113_p9 = scmp.ne.s32.totalorder %s2266_s11, %s2262_s10  ;;  %p114_p10 = scmp.eq.s32.totalorder %s2278_s14, 0 }
  0x18   : > { %p2038_p11 = scmp.lt.s32.totalorder %s2278_s14, 3  ;;  %s2739_s18 = smov (%p38_p8, %s36_s18), 0 }
  0x19   : > { %2726 = sst [smem:[#allocation15_spill]] %s2739_s18  ;;  %p2409_p12 = por %p114_p10, %p113_p9 }
  0x1a   : > { %s317_s22 = sand.u32 1, %s2266_s11   ;;  %s103_s23 = ssub.s32 %s2274_s13, %s2739_s18 }
  0x1b   : > { %p104_p13 = scmp.eq.s32.totalorder %s103_s23, 0  ;;  %s1598_s24 = sshll.u32 %s317_s22, 7 }
  0x1c   : > { %s1873_s25 = sshll.u32 %s2274_s13, 7  ;;  %s321_s27 = scalar_lea.vmem [#allocation5], %s1598_s24 }
  0x1d   : > { %s2418_s26 = scalar_select %p104_p13, %s2266_s11, %s106_s19  }
  0x1e   : > { %s326_s15 = scalar_lea.hbm %s2707_s3, %s1873_s25  ;;  %s329_s28 = sshll.u32 %s321_s27, 4  ;;  %s330_s28 = int_to_ptr.vmem [resolvable:$true] %s329_s28 }
  0x1f   : > { %s327_s5 = sshll.u32 %s326_s15, 4  ;;  %p2033_p0 = pnand %p2038_p11, %p2409_p12  ;;  %s328_s5 = int_to_ptr.hbm [resolvable:$true] %s327_s5 }
  0x20   : > { %s318_s7 = scalar_lea.sflag [#allocation6], %s317_s22  ;;  %s2728_s9 = smov 4  }
  0x21   : > { %s2729_s18 = smov 64   ;;  %347 = sbr.rel (%p2384_p5) target bundleno = 796 (0x31c), region = 56 }
  0x22   : > { %2035 = dma.hbm_to_vmem [thread:$0]  (!%p2033_p0), %s328_s5, 2048, %s330_s28, %s318_s7, %s2729_s18, %s2729_s18, %s2728_s9  }
  0x23   : > { %s349_s19 = sand.u32 (!%p2384_p5), 1, %s2262_s10  }
  0x24   : > { %s1602_s23 = sshll.u32 (!%p2384_p5), %s349_s19, 7  ;;  %s350_s24 = scalar_lea.sflag (!%p2384_p5), [#allocation6], %s349_s19 }
  0x25   : > { %s2433_s27 = scalar_lea.vmem (!%p2384_p5), [#allocation5], %s1602_s23 }
  0x26   : > { %2245 = dma.done.wait (%p2377_p4), %s350_s24, 2048  }
  0x27   : > { %2247 = vsyncadd (%p2377_p4), %s350_s24, 4294965248 }
  0x28   : > { %2249 = dma.done.wait (%p2369_p1), [#allocation9], 2048  }
  0x29   : > { %2251 = vsyncadd (%p2369_p1), [#allocation9], 4294965248  ;;  %p397_p2 = scmp.lt.s32.totalorder %s2270_s12, 2  ;;  %p401_p3 = scmp.lt.s32.totalorder %s2270_s12, 0 }
  0x2a   : > { %s402_s5 = ssub.s32 0, %s2270_s12  ;;  %p409_p5 = scmp.eq.s32.totalorder %s2270_s12, 0 }
  0x2b   : > { %s2448_s7 = scalar_select %p397_p2, %s2270_s12, 2  ;;  %v415_v0 = vld [vmem:[%s2706_s2] sm:$0xff] (%p409_p5)   ;;  %v417_v1 = vld [vmem:[%s2706_s2 + $0x8] sm:$0xff] (%p409_p5)   ;;  %v419_v2 = vld [vmem:[%s2706_s2 + $0x10] sm:$0xff] (%p409_p5)   ;;  %v2284_v8 = vmov (%p409_p5), 0.0  }
  0x2c   : > { %s1605_s9 = smin.u32 %s2270_s12, %s402_s5  ;;  %431 = vst [vmem:[#allocation2] sm:$0xff] (%p409_p5), %v415_v0   ;;  %v421_v3 = vld [vmem:[%s2706_s2 + $0x18] sm:$0xff] (%p409_p5)   ;;  %v423_v4 = vld [vmem:[%s2706_s2 + $0x20] sm:$0xff] (%p409_p5)   ;;  %v425_v5 = vld [vmem:[%s2706_s2 + $0x28] sm:$0xff] (%p409_p5)  }
  0x2d   : > { %s399_s21 = scalar_lea.vmem %s2708_s4, %s2448_s7  ;;  %s404_s16 = sand.u32 1, %s1605_s9   ;;  %433 = vst [vmem:[#allocation2 + $0x8] sm:$0xff] (%p409_p5), %v417_v1   ;;  %v427_v6 = vld [vmem:[%s2706_s2 + $0x30] sm:$0xff] (%p409_p5)   ;;  %v429_v7 = vld [vmem:[%s2706_s2 + $0x38] sm:$0xff] (%p409_p5)  }
  0x2e   : > { %s405_s28 = ssub.s32 0, %s404_s16  ;;  %414 = sbr.rel (!%p409_p5) target bundleno = 53 (0x35), region = 72  ;;  %435 = vst [vmem:[#allocation2 + $0x10] sm:$0xff] (%p409_p5), %v419_v2  }
  0x2f   : > { %s2741_s28 = smov (!%p401_p3, %s405_s28), %s404_s16  ;;  %437 = vst [vmem:[#allocation2 + $0x18] sm:$0xff] (%p409_p5), %v421_v3  }
  0x30   : > { %s1606_s18 = sshll.u32 %s2741_s28, 7  ;;  %439 = vst [vmem:[#allocation2 + $0x20] sm:$0xff] (%p409_p5), %v423_v4  }
  0x31   : > { %s2455_s20 = ssub.s32 128, %s1606_s18  ;;  %441 = vst [vmem:[#allocation2 + $0x28] sm:$0xff] (%p409_p5), %v425_v5  }
  0x32   : > { %443 = vst [vmem:[#allocation2 + $0x30] sm:$0xff] (%p409_p5), %v427_v6  }
  0x33   : > { %445 = vst [vmem:[#allocation2 + $0x38] sm:$0xff] %v429_v7  }
  0x34   : > { %447 = vst [vmem:[#allocation4] sm:$0x1] %v2284_v8 }
  0x35 PF: > { %s470_s30 = sshra.s32 %s1606_s18, 3  ;;  %v636_v9 = vld [vmem:[%s2705_s1] sm:$0xff]  ;;  %v2285_v10 = vmov 0   ;;  %v638_v11 = vld [vmem:[%s2705_s1 + $0x10] sm:$0xff]  ;;  %v637_v14 = vld [vmem:[%s2705_s1 + $0x8] sm:$0xff]  ;;  %p1196_p1 = scmp.eq.s32.totalorder %s2270_s12, 2 }
  0x36   : > { %s1608_s24 = sshll.u32 %s470_s30, 2  ;;  %2098 = vset.pattern.permute.xlu0 %v2285_v10  ;;  %2099 = vset.pattern.permute.xlu1 %v2285_v10  ;;  %v639_v15 = vld [vmem:[%s2705_s1 + $0x18] sm:$0xff]  ;;  %v640_v18 = vld [vmem:[%s2705_s1 + $0x20] sm:$0xff]  ;;  %v641_v19 = vld [vmem:[%s2705_s1 + $0x28] sm:$0xff]  ;;  %s1176_s25 = sshra.s32 %s2455_s20, 3 }
  0x37   : > { %675 = vperm.xlu0 %2098, %v636_v9   ;;  %685 = vperm.xlu1 %2099, %v638_v11   ;;  %s2487_s15 = scalar_lea.vmem [#allocation2], %s1608_s24  ;;  %v648_v21 = vld [vmem:[%s2705_s1 + $0x60] sm:$0xff]  ;;  %v651_v23 = vld [vmem:[%s2705_s1 + $0x78] sm:$0xff]  ;;  %v642_v24 = vld [vmem:[%s2705_s1 + $0x30] sm:$0xff]  ;;  %s1802_s29 = sshll.u32 %s1176_s25, 2 }
  0x38   : > { %2100 = vset.pattern.permute.xlu2 %v2285_v10  ;;  %v644_v27 = vld [vmem:[%s2705_s1 + $0x40] sm:$0xff]  ;;  %v645_v28 = vld [vmem:[%s2705_s1 + $0x48] sm:$0xff]  ;;  %v1881_v30 = vld [vmem:[%s2704_s0 + $0x30] sm:$0xff]  ;;  %s2624_s7 = scalar_lea.vmem [#allocation2], %s1802_s29  ;;  %p1803_p4 = scmp.ne.s32.totalorder %s2270_s12, 2 }
  0x39   : > { %735 = vperm.xlu2 %2100, %v648_v21   ;;  %v1875_v29 = vld [vmem:[%s2704_s0] sm:$0xff]  ;;  %v649_v31 = vld [vmem:[%s2705_s1 + $0x68] sm:$0xff]  ;;  %v647_v32 = vld [vmem:[%s2705_s1 + $0x58] sm:$0xff] }
  0x3a   : > { %v650_v33 = vld [vmem:[%s2705_s1 + $0x70] sm:$0xff]  ;;  %v1876_v34 = vld [vmem:[%s2704_s0 + $0x8] sm:$0xff]  ;;  %v1882_v35 = vld [vmem:[%s2704_s0 + $0x38] sm:$0xff] }
  0x3b   : > { %v643_v36 = vld [vmem:[%s2705_s1 + $0x38] sm:$0xff]  ;;  %v646_v37 = vld [vmem:[%s2705_s1 + $0x50] sm:$0xff]  ;;  %v1879_v40 = vld [vmem:[%s2704_s0 + $0x20] sm:$0xff] }
  0x3c   : > { %v1890_v12 = vld [vmem:[%s2487_s15 + $0x38] sm:$0xff]  ;;  %v1889_v13 = vld [vmem:[%s2487_s15 + $0x30] sm:$0xff]  ;;  %v1888_v16 = vld [vmem:[%s2487_s15 + $0x28] sm:$0xff] }
  0x3d   : > { %586 = vmatpush.bf16.msra.mxu0 %v1890_v12  ;;  %1987 = vmatpush.bf16.msra.mxu3 %v1890_v12  ;;  %v1887_v17 = vld [vmem:[%s2487_s15 + $0x20] sm:$0xff]  ;;  %v1886_v20 = vld [vmem:[%s2487_s15 + $0x18] sm:$0xff]  ;;  %v1885_v22 = vld [vmem:[%s2487_s15 + $0x10] sm:$0xff] }
  0x3e   : > { %v1884_v25 = vld [vmem:[%s2487_s15 + $0x8] sm:$0xff]  ;;  %v1883_v26 = vld [vmem:[%s2487_s15] sm:$0xff]  ;;  %v1877_v38 = vld [vmem:[%s2704_s0 + $0x10] sm:$0xff] }
  0x3f   : > { %680 = vperm.xlu0 %2098, %v637_v14   ;;  %690 = vperm.xlu1 %2099, %v639_v15   ;;  %v1878_v39 = vld [vmem:[%s2704_s0 + $0x18] sm:$0xff]  ;;  %v1920_v43 = vld [vmem:[%s2433_s27 + $0x68] sm:$0xff]  ;;  %v1919_v45 = vld [vmem:[%s2433_s27 + $0x60] sm:$0xff] }
  0x40   : > { %v1922_v41 = vld [vmem:[%s2433_s27 + $0x78] sm:$0xff]  ;;  %v1921_v42 = vld [vmem:[%s2433_s27 + $0x70] sm:$0xff]  ;;  %v1880_v46 = vld [vmem:[%s2704_s0 + $0x28] sm:$0xff] }
  0x41   : > { %587 = vmatpush.bf16.msra.mxu0 %v1889_v13  ;;  %1988 = vmatpush.bf16.msra.mxu3 %v1889_v13  ;;  %v1914_v44 = vld [vmem:[%s2433_s27 + $0x38] sm:$0xff]  ;;  %v1913_v47 = vld [vmem:[%s2433_s27 + $0x30] sm:$0xff]  ;;  %v1912_v49 = vld [vmem:[%s2433_s27 + $0x28] sm:$0xff] }
  0x42   : > { %740 = vperm.xlu2 %2100, %v649_v31   ;;  %1094 = vmatpush.bf16.msra.mxu2 %v1922_v41  ;;  %v1918_v48 = vld [vmem:[%s2433_s27 + $0x58] sm:$0xff]  ;;  %v2572_v50 = vld [vmem:[%s2433_s27 + $0x50] sm:$0xff]  ;;  %v658_v52 = vld [vmem:[%s2487_s15 + $0x4] sm:$0xf] }
  0x43   : > { %1045 = vmatpush.bf16.msra.mxu1 %v1914_v44  ;;  %v657_v51 = vld [vmem:[%s2487_s15] sm:$0xf]  ;;  %v1916_v54 = vld [vmem:[%s2433_s27 + $0x48] sm:$0xff]  ;;  %802 = vst [vmem:[#allocation3 + $0xc] sm:$0xf] %v658_v52  ;;  %v1909_v60 = vld [vmem:[%s2433_s27 + $0x10] sm:$0xff] }
  0x44   : > { %801 = vst [vmem:[#allocation3 + $0x4] sm:$0xf] %v657_v51  ;;  %v1911_v53 = vld [vmem:[%s2433_s27 + $0x20] sm:$0xff]  ;;  %v1910_v55 = vld [vmem:[%s2433_s27 + $0x18] sm:$0xff]  ;;  %v1908_v61 = vld [vmem:[%s2433_s27 + $0x8] sm:$0xff] }
  0x45   : > { %588 = vmatpush.bf16.msra.mxu0 %v1888_v16  ;;  %1989 = vmatpush.bf16.msra.mxu3 %v1888_v16  ;;  %v2581_v56 = vld [vmem:[%s2433_s27 + $0x40] sm:$0xff]  ;;  %v660_v63 = vld [vmem:[%s2487_s15 + $0xc] sm:$0xf]  ;;  %v661_v6 = vld [vmem:[%s2487_s15 + $0x10] sm:$0xf] }
  0x46   : > { %1095 = vmatpush.bf16.msra.mxu2 %v1921_v42  ;;  %v659_v62 = vld [vmem:[%s2487_s15 + $0x8] sm:$0xf]  ;;  %804 = vst [vmem:[#allocation3 + $0x1c] sm:$0xf] %v660_v63  ;;  %v662_v7 = vld [vmem:[%s2487_s15 + $0x14] sm:$0xf] }
  0x47   : > { %695 = vperm.xlu0 %2098, %v640_v18   ;;  %700 = vperm.xlu1 %2099, %v641_v19   ;;  %803 = vst [vmem:[#allocation3 + $0x14] sm:$0xf] %v659_v62  ;;  %v1907_v0 = vld [vmem:[%s2433_s27] sm:$0xff] }
  0x48   : > { %1046 = vmatpush.bf16.msra.mxu1 %v1913_v47  ;;  %805 = vst [vmem:[#allocation3 + $0x24] sm:$0xf] %v661_v6 }
  0x49   : > { %589 = vmatpush.bf16.msra.mxu0 %v1887_v17  ;;  %1990 = vmatpush.bf16.msra.mxu3 %v1887_v17  ;;  %806 = vst [vmem:[#allocation3 + $0x2c] sm:$0xf] %v662_v7 }
  0x4a   : > { %745 = vperm.xlu2 %2100, %v650_v33   ;;  %1096 = vmatpush.bf16.msra.mxu2 %v1920_v43  ;;  %v1678_v58 = vld [vmem:[#allocation3 + $0x8] sm:$0xf0] }
  0x4b   : > { %v1891_v57 = vld [vmem:[#allocation3 + $0x4] sm:$0xf] }
  0x4c   : > { %1047 = vmatpush.bf16.msra.mxu1 %v1912_v49  ;;  %v1681_v59 = vor.u32 %v1891_v57, %v1678_v58 }
  0x4d   : > { %590 = vmatpush.bf16.msra.mxu0 %v1886_v20  ;;  %1991 = vmatpush.bf16.msra.mxu3 %v1886_v20  ;;  %v1686_v2 = vld [vmem:[#allocation3 + $0x18] sm:$0xf0] }
  0x4e   : > { %1097 = vmatpush.bf16.msra.mxu2 %v1919_v45  ;;  %v1893_v1 = vld [vmem:[#allocation3 + $0x14] sm:$0xf] }
  0x4f   : > { %750 = vperm.xlu0 %2098, %v651_v23   ;;  %705 = vperm.xlu1 %2099, %v642_v24   ;;  %v1689_v3 = vor.u32 %v1893_v1, %v1686_v2  ;;  %v1895_v15 = vld [vmem:[#allocation3 + $0x24] sm:$0xf] }
  0x50   : > { %1048 = vmatpush.bf16.msra.mxu1 %v1911_v53  ;;  %v1694_v18 = vld [vmem:[#allocation3 + $0x28] sm:$0xf0] }
  0x51   : > { %591 = vmatpush.bf16.msra.mxu0 %v1885_v22  ;;  %1992 = vmatpush.bf16.msra.mxu3 %v1885_v22  ;;  %v1697_v19 = vor.u32 %v1895_v15, %v1694_v18 }
  0x52   : > { %710 = vperm.xlu2 %2100, %v643_v36   ;;  %1098 = vmatpush.bf16.msra.mxu2 %v1918_v48 }
  0x54   : > { %1049 = vmatpush.bf16.msra.mxu1 %v1910_v55 }
  0x55   : > { %592 = vmatpush.bf16.msra.mxu0 %v1884_v25  ;;  %1993 = vmatpush.bf16.msra.mxu3 %v1884_v25 }
  0x56   : > { %1099 = vmatpush.bf16.msra.mxu2 %v2572_v50 }
  0x57   : > { %715 = vperm.xlu0 %2098, %v644_v27   ;;  %720 = vperm.xlu1 %2099, %v645_v28   ;;  %v664_v27 = vld [vmem:[%s2487_s15 + $0x1c] sm:$0xf] }
  0x58   : > { %1050 = vmatpush.bf16.msra.mxu1 %v1909_v60  ;;  %808 = vst [vmem:[#allocation3 + $0x3c] sm:$0xf] %v664_v27 }
  0x59   : > { %593 = vmatpush.bf16.msra.mxu0 %v1883_v26  ;;  %1994 = vmatpush.bf16.msra.mxu3 %v1883_v26  ;;  %v663_v26 = vld [vmem:[%s2487_s15 + $0x18] sm:$0xf] }
  0x5a   : > { %725 = vperm.xlu2 %2100, %v646_v37   ;;  %1100 = vmatpush.bf16.msra.mxu2 %v1916_v54  ;;  %807 = vst [vmem:[#allocation3 + $0x34] sm:$0xf] %v663_v26 }
  0x5c   : > { %594 = vmatmul.bf16.vlgmr.msra.gmra.mxu0 %v1875_v29  ;;  %624 = vmatmul.bf16.vlgmr.msra.gmra.mxu3 %v1881_v30  ;;  %v669_v30 = vld [vmem:[%s2487_s15 + $0x30] sm:$0xf] }
  0x5d   : > { %1995 = vmatpush.bf16.msrb.mxu3 %v1914_v44  ;;  %1051 = vmatpush.bf16.msra.mxu1 %v1908_v61  ;;  %813 = vst [vmem:[#allocation3 + $0x64] sm:$0xf] %v669_v30 }
  0x5e   : > { %1101 = vmatpush.bf16.msra.mxu2 %v2581_v56 }
  0x5f   : > { %730 = vperm.xlu0 %2098, %v647_v32   ;;  %v670_v32 = vld [vmem:[%s2487_s15 + $0x34] sm:$0xf] }
  0x60   : > { %814 = vst [vmem:[#allocation3 + $0x6c] sm:$0xf] %v670_v32 }
  0x61   : > { %1996 = vmatpush.bf16.msrb.mxu3 %v1913_v47  ;;  %1102 = vmatmul.bf16.vlgmr.msra.gmra.mxu2 %v1681_v59  ;;  %v671_v59 = vld [vmem:[%s2487_s15 + $0x38] sm:$0xf] }
  0x62   : > { %1052 = vmatpush.bf16.msra.mxu1 %v1907_v0  ;;  %815 = vst [vmem:[#allocation3 + $0x74] sm:$0xf] %v671_v59 }
  0x65   : > { %1997 = vmatpush.bf16.msrb.mxu3 %v1912_v49 }
  0x69   : > { %1998 = vmatpush.bf16.msrb.mxu3 %v1911_v53 }
  0x6c   : > { %599 = vmatmul.bf16.gmra.mxu0 %v1876_v34  ;;  %629 = vmatmul.bf16.gmra.mxu3 %v1882_v35 }
  0x6d   : > { %1999 = vmatpush.bf16.msrb.mxu3 %v1910_v55  ;;  %v665_v55 = vld [vmem:[%s2487_s15 + $0x20] sm:$0xf] }
  0x6e   : > { %809 = vst [vmem:[#allocation3 + $0x44] sm:$0xf] %v665_v55 }
  0x71   : > { %2000 = vmatpush.bf16.msrb.mxu3 %v1909_v60  ;;  %1107 = vmatmul.bf16.gmra.mxu2 %v1689_v3 }
  0x75   : > { %2001 = vmatpush.bf16.msrb.mxu3 %v1908_v61  ;;  %v672_v61 = vld [vmem:[%s2487_s15 + $0x3c] sm:$0xf]  ;;  %v1899_v3 = vld [vmem:[#allocation3 + $0x44] sm:$0xf] }
  0x76   : > { %816 = vst [vmem:[#allocation3 + $0x7c] sm:$0xf] %v672_v61 }
  0x79   : > { %2002 = vmatpush.bf16.msrb.mxu3 %v1907_v0 }
  0x7c   : > { %604 = vmatmul.bf16.gmra.mxu0 %v1877_v38 }
  0x7d   : > { %2003 = vmatpush.bf16.msra.mxu3 %v1922_v41 }
  0x81   : > { %2004 = vmatpush.bf16.msra.mxu3 %v1921_v42  ;;  %1112 = vmatmul.bf16.gmra.mxu2 %v1697_v19 }
  0x85   : > { %2005 = vmatpush.bf16.msra.mxu3 %v1920_v43  ;;  %v1897_v43 = vld [vmem:[#allocation3 + $0x34] sm:$0xf] }
  0x89   : > { %2006 = vmatpush.bf16.msra.mxu3 %v1919_v45 }
  0x8c   : > { %609 = vmatmul.bf16.gmra.mxu0 %v1878_v39 }
  0x8d   : > { %2007 = vmatpush.bf16.msra.mxu3 %v1918_v48 }
  0x91   : > { %2008 = vmatpush.bf16.msra.mxu3 %v2572_v50 }
  0x93   : > { %v736_v9 = vpop.permute.xlu2 %735 }
  0x95   : > { %2009 = vmatpush.bf16.msra.mxu3 %v1916_v54 }
  0x99   : > { %2010 = vmatpush.bf16.msra.mxu3 %v2581_v56  ;;  %v666_v56 = vld [vmem:[%s2487_s15 + $0x24] sm:$0xf] }
  0x9a   : > { %810 = vst [vmem:[#allocation3 + $0x4c] sm:$0xf] %v666_v56 }
  0x9c   : > { %614 = vmatmul.bf16.gmra.mxu0 %v1879_v40  ;;  %v741_v21 = vpop.permute.xlu2 %740 }
  0xa4   : > { %v746_v37 = vpop.permute.xlu2 %745 }
  0xa9   : > { %v676_v4 = vpop.permute.xlu0 %675  ;;  %v686_v22 = vpop.permute.xlu1 %685 }
  0xac   : > { %619 = vmatmul.bf16.gmra.mxu0 %v1880_v46  ;;  %v1702_v46 = vld [vmem:[#allocation3 + $0x38] sm:$0xf0] }
  0xad   : > { %v1705_v48 = vor.u32 %v1897_v43, %v1702_v46 }
  0xaf   : > { %1117 = vmatmul.bf16.gmra.mxu2 %v1705_v48 }
  0xb1   : > { %v681_v13 = vpop.permute.xlu0 %680  ;;  %v691_v40 = vpop.permute.xlu1 %690 }
  0xb9   : > { %v696_v33 = vpop.permute.xlu0 %695  ;;  %v701_v1 = vpop.permute.xlu1 %700 }
  0xc1   : > { %v751_v51 = vpop.permute.xlu0 %750 }
  0xc9   : > { %v716_v30 = vpop.permute.xlu0 %715 }
  0xd9   : > { %v595_v5 = vpop.f32.mrf.mxu0 }
  0xda   : > { %v753_v8 = vmul.f32 %v676_v4, %v595_v5  ;;  %v1710_v5 = vld [vmem:[#allocation3 + $0x48] sm:$0xf0] }
  0xdc   : > { %v769_v10 = vpack.c.bf16 %v753_v8, %v753_v8  ;;  %v1713_v8 = vor.u32 %v1899_v3, %v1710_v5 }
  0xde   : > { %785 = vst [vmem:[#allocation3] sm:$0xf] %v769_v10  ;;  %1122 = vmatmul.bf16.gmra.mxu2 %v1713_v8 }
  0xdf   : > { %v625_v11 = vpop.f32.mrf.mxu3 }
  0xe0   : > { %v765_v12 = vmul.f32 %v736_v9, %v625_v11  ;;  %v706_v11 = vpop.permute.xlu1 %705 }
  0xe1   : > { %v597_v14 = vpop.f32.mrf.mxu0 }
  0xe2   : > { %v781_v16 = vpack.c.bf16 %v765_v12, %v765_v12  ;;  %v754_v17 = vmul.f32 %v681_v13, %v597_v14  ;;  %v667_v13 = vld [vmem:[%s2487_s15 + $0x28] sm:$0xf]  ;;  %v668_v14 = vld [vmem:[%s2487_s15 + $0x2c] sm:$0xf] }
  0xe3   : > { %811 = vst [vmem:[#allocation3 + $0x54] sm:$0xf] %v667_v13 }
  0xe4   : > { %797 = vst [vmem:[#allocation3 + $0x60] sm:$0xf] %v781_v16  ;;  %v770_v20 = vpack.c.bf16 %v754_v17, %v754_v17 }
  0xe5   : > { %v1676_v34 = vld [vmem:[#allocation3] sm:$0xf]  ;;  %812 = vst [vmem:[#allocation3 + $0x5c] sm:$0xf] %v668_v14 }
  0xe6   : > { %786 = vst [vmem:[#allocation3 + $0x8] sm:$0xf] %v770_v20  ;;  %v1903_v20 = vld [vmem:[#allocation3 + $0x64] sm:$0xf] }
  0xe7   : > { %v627_v23 = vpop.f32.mrf.mxu3 }
  0xe8   : > { %v766_v24 = vmul.f32 %v741_v21, %v627_v23  ;;  %v1726_v21 = vld [vmem:[#allocation3 + $0x68] sm:$0xf0] }
  0xe9   : > { %v600_v25 = vpop.f32.mrf.mxu0  ;;  %v1729_v26 = vor.u32 %v1903_v20, %v1726_v21 }
  0xea   : > { %v782_v28 = vpack.c.bf16 %v766_v24, %v766_v24  ;;  %v755_v29 = vmul.f32 %v686_v22, %v600_v25  ;;  %v711_v22 = vpop.permute.xlu2 %710  ;;  %v1901_v24 = vld [vmem:[#allocation3 + $0x54] sm:$0xf] }
  0xeb   : > { %v1724_v42 = vld [vmem:[#allocation3 + $0x60] sm:$0xf] }
  0xec   : > { %798 = vst [vmem:[#allocation3 + $0x68] sm:$0xf] %v782_v28  ;;  %v771_v31 = vpack.c.bf16 %v755_v29, %v755_v29  ;;  %v1718_v27 = vld [vmem:[#allocation3 + $0x58] sm:$0xf0] }
  0xed   : > { %v1892_v35 = vld [vmem:[#allocation3 + $0x4] sm:$0xf0]  ;;  %v1721_v28 = vor.u32 %v1901_v24, %v1718_v27 }
  0xee   : > { %787 = vst [vmem:[#allocation3 + $0x10] sm:$0xf] %v771_v31  ;;  %v1677_v36 = vor.u32 %v1892_v35, %v1676_v34 }
  0xef   : > { %v630_v38 = vpop.f32.mrf.mxu3  ;;  %1127 = vmatmul.bf16.gmra.mxu2 %v1721_v28 }
  0xf0   : > { %v767_v39 = vmul.f32 %v746_v37, %v630_v38  ;;  %1053 = vmatmul.bf16.vlgmr.msra.gmra.mxu1 %v1677_v36  ;;  %v1905_v37 = vld [vmem:[#allocation3 + $0x74] sm:$0xf]  ;;  %v1734_v38 = vld [vmem:[#allocation3 + $0x78] sm:$0xf0] }
  0xf1   : > { %v602_v41 = vpop.f32.mrf.mxu0 }
  0xf2   : > { %v783_v44 = vpack.c.bf16 %v767_v39, %v767_v39  ;;  %v756_v45 = vmul.f32 %v691_v40, %v602_v41  ;;  %v721_v39 = vpop.permute.xlu1 %720 }
  0xf3   : > { %v1904_v47 = vld [vmem:[#allocation3 + $0x64] sm:$0xf0] }
  0xf4   : > { %799 = vst [vmem:[#allocation3 + $0x70] sm:$0xf] %v783_v44  ;;  %v772_v49 = vpack.c.bf16 %v756_v45, %v756_v45  ;;  %v1725_v50 = vor.u32 %v1904_v47, %v1724_v42  ;;  %v1737_v42 = vor.u32 %v1905_v37, %v1734_v38  ;;  %v726_v44 = vpop.permute.xlu2 %725 }
  0xf5   : > { %v1684_v62 = vld [vmem:[#allocation3 + $0x10] sm:$0xf] }
  0xf6   : > { %788 = vst [vmem:[#allocation3 + $0x18] sm:$0xf] %v772_v49  ;;  %1083 = vmatmul.bf16.vlgmr.msrb.gmra.mxu3 %v1725_v50 }
  0xf7   : > { %v632_v52 = vpop.f32.mrf.mxu3 }
  0xf8   : > { %v768_v53 = vmul.f32 %v751_v51, %v632_v52  ;;  %v731_v51 = vpop.permute.xlu0 %730 }
  0xf9   : > { %v605_v54 = vpop.f32.mrf.mxu0 }
  0xfa   : > { %v784_v57 = vpack.c.bf16 %v768_v53, %v768_v53  ;;  %v757_v58 = vmul.f32 %v696_v33, %v605_v54 }
  0xfb   : > { %v1732_v6 = vld [vmem:[#allocation3 + $0x70] sm:$0xf] }
  0xfc   : > { %800 = vst [vmem:[#allocation3 + $0x78] sm:$0xf] %v784_v57  ;;  %v773_v60 = vpack.c.bf16 %v757_v58, %v757_v58  ;;  %v1103_v58 = vpop.f32.mrf.mxu2 }
  0xfd   : > { %v1894_v63 = vld [vmem:[#allocation3 + $0x14] sm:$0xf0] }
  0xfe   : > { %789 = vst [vmem:[#allocation3 + $0x20] sm:$0xf] %v773_v60  ;;  %v1685_v0 = vor.u32 %v1894_v63, %v1684_v62  ;;  %v2609_v62 = vld [vmem:[%s399_s21] ss:$0 sm:$0xff] }
 0x100   : > { %1058 = vmatmul.bf16.gmra.mxu1 %v1685_v0 }
 0x101   : > { %v607_v2 = vpop.f32.mrf.mxu0 }
 0x102   : > { %v758_v4 = vmul.f32 %v701_v1, %v607_v2 }
 0x103   : > { %v1906_v7 = vld [vmem:[#allocation3 + $0x74] sm:$0xf0] }
 0x104   : > { %v774_v9 = vpack.c.bf16 %v758_v4, %v758_v4  ;;  %v1733_v10 = vor.u32 %v1906_v7, %v1732_v6  ;;  %v1105_v59 = vpop.f32.mrf.mxu2 }
 0x105   : > { %v1692_v17 = vld [vmem:[#allocation3 + $0x20] sm:$0xf] }
 0x106   : > { %790 = vst [vmem:[#allocation3 + $0x28] sm:$0xf] %v774_v9  ;;  %1088 = vmatmul.bf16.gmra.mxu3 %v1733_v10 }
 0x109   : > { %v610_v12 = vpop.f32.mrf.mxu0 }
 0x10a   : > { %v759_v15 = vmul.f32 %v706_v11, %v610_v12 }
 0x10c   : > { %v775_v16 = vpack.c.bf16 %v759_v15, %v759_v15  ;;  %v1108_v61 = vpop.f32.mrf.mxu2 }
 0x10d   : > { %v1896_v18 = vld [vmem:[#allocation3 + $0x24] sm:$0xf0] }
 0x10e   : > { %791 = vst [vmem:[#allocation3 + $0x30] sm:$0xf] %v775_v16  ;;  %v1693_v19 = vor.u32 %v1896_v18, %v1692_v17 }
 0x110   : > { %1063 = vmatmul.bf16.gmra.mxu1 %v1693_v19 }
 0x111   : > { %v612_v23 = vpop.f32.mrf.mxu0 }
 0x112   : > { %v760_v25 = vmul.f32 %v711_v22, %v612_v23 }
 0x114   : > { %v776_v29 = vpack.c.bf16 %v760_v25, %v760_v25  ;;  %v1110_v3 = vpop.f32.mrf.mxu2 }
 0x115   : > { %v1700_v34 = vld [vmem:[#allocation3 + $0x30] sm:$0xf] }
 0x116   : > { %792 = vst [vmem:[#allocation3 + $0x38] sm:$0xf] %v776_v29  ;;  %1132 = vmatmul.bf16.vlgmr.msra.gmra.mxu3 %v1729_v26 }
 0x119   : > { %v615_v31 = vpop.f32.mrf.mxu0 }
 0x11a   : > { %v761_v32 = vmul.f32 %v716_v30, %v615_v31 }
 0x11c   : > { %v777_v33 = vpack.c.bf16 %v761_v32, %v761_v32  ;;  %v1113_v11 = vpop.f32.mrf.mxu2 }
 0x11d   : > { %v1898_v35 = vld [vmem:[#allocation3 + $0x34] sm:$0xf0] }
 0x11e   : > { %793 = vst [vmem:[#allocation3 + $0x40] sm:$0xf] %v777_v33  ;;  %v1701_v36 = vor.u32 %v1898_v35, %v1700_v34 }
 0x120   : > { %1068 = vmatmul.bf16.gmra.mxu1 %v1701_v36 }
 0x121   : > { %v617_v40 = vpop.f32.mrf.mxu0 }
 0x122   : > { %v762_v41 = vmul.f32 %v721_v39, %v617_v40 }
 0x124   : > { %v778_v43 = vpack.c.bf16 %v762_v41, %v762_v41  ;;  %v1115_v20 = vpop.f32.mrf.mxu2 }
 0x125   : > { %v1708_v48 = vld [vmem:[#allocation3 + $0x40] sm:$0xf] }
 0x126   : > { %794 = vst [vmem:[#allocation3 + $0x48] sm:$0xf] %v778_v43  ;;  %1137 = vmatmul.bf16.gmra.mxu3 %v1737_v42 }
 0x129   : > { %v620_v45 = vpop.f32.mrf.mxu0 }
 0x12a   : > { %v763_v46 = vmul.f32 %v726_v44, %v620_v45 }
 0x12c   : > { %v779_v47 = vpack.c.bf16 %v763_v46, %v763_v46 }
 0x12d   : > { %v1900_v49 = vld [vmem:[#allocation3 + $0x44] sm:$0xf0] }
 0x12e   : > { %795 = vst [vmem:[#allocation3 + $0x50] sm:$0xf] %v779_v47  ;;  %v1709_v50 = vor.u32 %v1900_v49, %v1708_v48 }
 0x130   : > { %1073 = vmatmul.bf16.gmra.mxu1 %v1709_v50 }
 0x131   : > { %v622_v52 = vpop.f32.mrf.mxu0 }
 0x132   : > { %v764_v53 = vmul.f32 %v731_v51, %v622_v52  ;;  %v1118_v26 = vpop.f32.mrf.mxu2 }
 0x134   : > { %v780_v54 = vpack.c.bf16 %v764_v53, %v764_v53 }
 0x135   : > { %v1716_v55 = vld [vmem:[#allocation3 + $0x50] sm:$0xf] }
 0x136   : > { %796 = vst [vmem:[#allocation3 + $0x58] sm:$0xf] %v780_v54 }
 0x13a   : > { %v1120_v36 = vpop.f32.mrf.mxu2 }
 0x13d   : > { %v1902_v56 = vld [vmem:[#allocation3 + $0x54] sm:$0xf0] }
 0x13e   : > { %v1717_v57 = vor.u32 %v1902_v56, %v1716_v55 }
 0x140   : > { %1078 = vmatmul.bf16.gmra.mxu1 %v1717_v57 }
 0x161   : > { %v1123_v49 = vpop.f32.mrf.mxu2 }
 0x16d   : > { %v1054_v60 = vpop.f32.mrf.mxu1 }
 0x16e   : > { %v1055_v63 = vadd.f32 %v2609_v62, %v1054_v60 }
 0x170   : > { %v2613_v1 = vadd.f32 %v1103_v58, %v1055_v63 }
 0x172   : > { %v1143_v6 = vmax.f32 %v2613_v1, 0.0 }
 0x175   : > { %v1056_v0 = vpop.f32.mrf.mxu1 }
 0x176   : > { %v1057_v2 = vadd.f32 %v2609_v62, %v1056_v0 }
 0x178   : > { %v2616_v4 = vadd.f32 %v1105_v59, %v1057_v2 }
 0x179   : > { %v1084_v5 = vpop.f32.mrf.mxu3 }
 0x17a   : > { %v1144_v7 = vmax.f32 %v2616_v4, 0.0  ;;  %v1085_v35 = vadd.f32 %v2609_v62, %v1084_v5 }
 0x17c   : > { %v1943_v8 = vpack.c.bf16 %v1144_v7, %v1143_v6 }
 0x17d   : > { %v1059_v9 = vpop.f32.mrf.mxu1 }
 0x17e   : > { %1944 = vst [vmem:[%s2624_s7] sm:$0xff] %v1943_v8   ;;  %v1060_v12 = vadd.f32 %v2609_v62, %v1059_v9 }
 0x180   : > { %v2628_v14 = vadd.f32 %v1108_v61, %v1060_v12  ;;  %v1125_v61 = vpop.f32.mrf.mxu2 }
 0x181   : > { %v1086_v10 = vpop.f32.mrf.mxu3 }
 0x182   : > { %v1145_v18 = vmax.f32 %v2628_v14, 0.0  ;;  %v1087_v37 = vadd.f32 %v2609_v62, %v1086_v10 }
 0x185   : > { %v1061_v13 = vpop.f32.mrf.mxu1 }
 0x186   : > { %v1062_v15 = vadd.f32 %v2609_v62, %v1061_v13 }
 0x188   : > { %v2631_v16 = vadd.f32 %v1110_v3, %v1062_v15  ;;  %v1128_v13 = vpop.f32.mrf.mxu2 }
 0x189   : > { %v1089_v17 = vpop.f32.mrf.mxu3 }
 0x18a   : > { %v1146_v19 = vmax.f32 %v2631_v16, 0.0  ;;  %v1090_v55 = vadd.f32 %v2609_v62, %v1089_v17 }
 0x18c   : > { %v1948_v21 = vpack.c.bf16 %v1146_v19, %v1145_v18 }
 0x18d   : > { %v1064_v22 = vpop.f32.mrf.mxu1 }
 0x18e   : > { %1980 = vst [vmem:[%s2624_s7 + $0x8] sm:$0xff] %v1948_v21   ;;  %v1065_v24 = vadd.f32 %v2609_v62, %v1064_v22 }
 0x190   : > { %v2641_v27 = vadd.f32 %v1113_v11, %v1065_v24 }
 0x191   : > { %v1091_v23 = vpop.f32.mrf.mxu3 }
 0x192   : > { %v1147_v31 = vmax.f32 %v2641_v27, 0.0  ;;  %v1092_v56 = vadd.f32 %v2609_v62, %v1091_v23  ;;  %v1130_v23 = vpop.f32.mrf.mxu2 }
 0x195   : > { %v1066_v25 = vpop.f32.mrf.mxu1 }
 0x196   : > { %v1067_v28 = vadd.f32 %v2609_v62, %v1066_v25 }
 0x198   : > { %v2644_v29 = vadd.f32 %v1115_v20, %v1067_v28 }
 0x199   : > { %v1133_v30 = vpop.f32.mrf.mxu3 }
 0x19a   : > { %v1148_v32 = vmax.f32 %v2644_v29, 0.0  ;;  %v1134_v38 = vadd.f32 %v1133_v30, %v1085_v35 }
 0x19c   : > { %v1953_v33 = vpack.c.bf16 %v1148_v32, %v1147_v31  ;;  %v1155_v42 = vmax.f32 %v1134_v38, 0.0 }
 0x19d   : > { %v1069_v34 = vpop.f32.mrf.mxu1 }
 0x19e   : > { %1981 = vst [vmem:[%s2624_s7 + $0x10] sm:$0xff] %v1953_v33   ;;  %v1070_v40 = vadd.f32 %v2609_v62, %v1069_v34 }
 0x1a0   : > { %v1119_v45 = vadd.f32 %v1118_v26, %v1070_v40 }
 0x1a1   : > { %v1135_v39 = vpop.f32.mrf.mxu3 }
 0x1a2   : > { %v1136_v41 = vadd.f32 %v1135_v39, %v1087_v37  ;;  %v1149_v51 = vmax.f32 %v1119_v45, 0.0 }
 0x1a4   : > { %v1156_v43 = vmax.f32 %v1136_v41, 0.0 }
 0x1a5   : > { %v1071_v44 = vpop.f32.mrf.mxu1 }
 0x1a6   : > { %v1973_v46 = vpack.c.bf16 %v1156_v43, %v1155_v42  ;;  %v1072_v47 = vadd.f32 %v2609_v62, %v1071_v44 }
 0x1a8   : > { %1985 = vst [vmem:[%s2624_s7 + $0x30] sm:$0xff] %v1973_v46   ;;  %v1121_v48 = vadd.f32 %v1120_v36, %v1072_v47 }
 0x1a9   : > { %v1138_v50 = vpop.f32.mrf.mxu3 }
 0x1aa   : > { %v1150_v52 = vmax.f32 %v1121_v48, 0.0  ;;  %v1139_v57 = vadd.f32 %v1138_v50, %v1090_v55 }
 0x1ac   : > { %v1958_v53 = vpack.c.bf16 %v1150_v52, %v1149_v51  ;;  %v1157_v63 = vmax.f32 %v1139_v57, 0.0 }
 0x1ad   : > { %v1074_v54 = vpop.f32.mrf.mxu1 }
 0x1ae   : > { %1982 = vst [vmem:[%s2624_s7 + $0x18] sm:$0xff] %v1958_v53   ;;  %v1075_v59 = vadd.f32 %v2609_v62, %v1074_v54 }
 0x1b0   : > { %v1124_v3 = vadd.f32 %v1123_v49, %v1075_v59 }
 0x1b1   : > { %v1140_v58 = vpop.f32.mrf.mxu3 }
 0x1b2   : > { %v1141_v60 = vadd.f32 %v1140_v58, %v1092_v56  ;;  %v1151_v10 = vmax.f32 %v1124_v3, 0.0 }
 0x1b4   : > { %v1158_v0 = vmax.f32 %v1141_v60, 0.0 }
 0x1b5   : > { %v1076_v2 = vpop.f32.mrf.mxu1 }
 0x1b6   : > { %v1978_v5 = vpack.c.bf16 %v1158_v0, %v1157_v63  ;;  %v1077_v8 = vadd.f32 %v2609_v62, %v1076_v2 }
 0x1b8   : > { %1986 = vst [vmem:[%s2624_s7 + $0x38] sm:$0xff] %v1978_v5   ;;  %v1126_v9 = vadd.f32 %v1125_v61, %v1077_v8 }
 0x1ba   : > { %v1152_v11 = vmax.f32 %v1126_v9, 0.0 }
 0x1bc   : > { %v1963_v12 = vpack.c.bf16 %v1152_v11, %v1151_v10 }
 0x1bd   : > { %v1079_v15 = vpop.f32.mrf.mxu1 }
 0x1be   : > { %1983 = vst [vmem:[%s2624_s7 + $0x20] sm:$0xff] %v1963_v12   ;;  %v1080_v17 = vadd.f32 %v2609_v62, %v1079_v15 }
 0x1c0   : > { %v1129_v21 = vadd.f32 %v1128_v13, %v1080_v17 }
 0x1c2   : > { %v1153_v25 = vmax.f32 %v1129_v21, 0.0 }
 0x1c5   : > { %v1081_v20 = vpop.f32.mrf.mxu1 }
 0x1c6   : > { %v1082_v22 = vadd.f32 %v2609_v62, %v1081_v20 }
 0x1c8   : > { %v1131_v24 = vadd.f32 %v1130_v23, %v1082_v22 }
 0x1ca   : > { %v1154_v26 = vmax.f32 %v1131_v24, 0.0  ;;  %1199 = sbr.rel (%p1803_p4) target bundleno = 488 (0x1e8), region = 76 }
 0x1cc   : > { %v1968_v27 = vpack.c.bf16 %v1154_v26, %v1153_v25 }
 0x1ce   : > { %1984 = vst [vmem:[%s2624_s7 + $0x28] sm:$0xff] %v1968_v27  }
 0x1cf   : > { %v1299_v28 = vmax.f32 %v1143_v6, %v1147_v31  ;;  %v1300_v29 = vmax.f32 %v1144_v7, %v1148_v32  ;;  %v1301_v30 = vmax.f32 %v1145_v18, %v1149_v51  ;;  %v1302_v62 = vmax.f32 %v1146_v19, %v1150_v52  ;;  %v1298_v18 = vld [vmem:[#allocation4] sm:$0x1] }
 0x1d1   : > { %v1303_v33 = vmax.f32 %v1299_v28, 0.0  ;;  %v1304_v34 = vmax.f32 %v1300_v29, 0.0  ;;  %v1305_v35 = vmax.f32 %v1301_v30, 0.0  ;;  %v1306_v36 = vmax.f32 %v1302_v62, 0.0 }
 0x1d3   : > { %v1307_v37 = vmax.f32 %v1303_v33, 0.0  ;;  %v1308_v38 = vmax.f32 %v1304_v34, 0.0  ;;  %v1309_v39 = vmax.f32 %v1305_v35, 0.0  ;;  %v1310_v40 = vmax.f32 %v1306_v36, 0.0 }
 0x1d5   : > { %v1311_v41 = vmax.f32 %v1307_v37, %v1308_v38  ;;  %v1312_v1 = vmax.f32 %v1309_v39, %v1310_v40 }
 0x1d7   : > { %v1313_v6 = vmax.f32 %v1311_v41, %v1312_v1 }
 0x1d9   : > { %v1314_v31 = vrot.slane %v1313_v6, 4 }
 0x1db   : > { %v1315_v4 = vmax.f32 %v1313_v6, %v1314_v31 }
 0x1dd   : > { %v1316_v7 = vrot.slane %v1315_v4, 2 }
 0x1df   : > { %v1317_v32 = vmax.f32 %v1315_v4, %v1316_v7 }
 0x1e1   : > { %v1318_v14 = vrot.slane %v1317_v32, 1 }
 0x1e3   : > { %v1319_v42 = vmax.f32 %v1317_v32, %v1318_v14 }
 0x1e5   : > { %v1320_v16 = vmax.f32 %v1298_v18, %v1319_v42 }
 0x1e7   : > { %1321 = vst [vmem:[#allocation4] sm:$0x1] %v1320_v16 }
 0x1e8 PF: > { %1325 = sbr.rel (!%p1196_p1) target bundleno = 786 (0x312), region = 80  ;;  %v1931_v19 = vld [vmem:[#allocation8 + $0x38] sm:$0xff] (%p1196_p1)  ;;  %v1930_v43 = vld [vmem:[#allocation8 + $0x30] sm:$0xff] (%p1196_p1)  ;;  %v1929_v46 = vld [vmem:[#allocation8 + $0x28] sm:$0xff] (%p1196_p1) }
 0x1e9   : > { %1393 = vmatpush.bf16.msra.mxu0 (%p1196_p1), %v1931_v19  ;;  %v1939_v44 = vld [vmem:[#allocation10 + $0x38] sm:$0xff] (%p1196_p1)  ;;  %v1938_v45 = vld [vmem:[#allocation10 + $0x30] sm:$0xff] (%p1196_p1)  ;;  %v1937_v47 = vld [vmem:[#allocation10 + $0x28] sm:$0xff] (%p1196_p1) }
 0x1ea   : > { %1473 = vmatpush.bf16.msra.mxu1 (%p1196_p1), %v1939_v44  ;;  %v1928_v48 = vld [vmem:[#allocation8 + $0x20] sm:$0xff] (%p1196_p1)  ;;  %v1927_v50 = vld [vmem:[#allocation8 + $0x18] sm:$0xff] (%p1196_p1)  ;;  %v1926_v52 = vld [vmem:[#allocation8 + $0x10] sm:$0xff] (%p1196_p1) }
 0x1eb   : > { %v1936_v49 = vld [vmem:[#allocation10 + $0x20] sm:$0xff] (%p1196_p1)  ;;  %v1935_v51 = vld [vmem:[#allocation10 + $0x18] sm:$0xff] (%p1196_p1)  ;;  %v1934_v53 = vld [vmem:[#allocation10 + $0x10] sm:$0xff] (%p1196_p1) }
 0x1ec   : > { %v1925_v54 = vld [vmem:[#allocation8 + $0x8] sm:$0xff] (%p1196_p1)  ;;  %v1924_v55 = vld [vmem:[#allocation8] sm:$0xff] (%p1196_p1)  ;;  %v1344_v60 = vld [vmem:[%s2710_s6] sm:$0x1] (%p1196_p1) }
 0x1ed   : > { %1394 = vmatpush.bf16.msra.mxu0 %v1930_v43  ;;  %v1933_v58 = vld [vmem:[#allocation10 + $0x8] sm:$0xff]  ;;  %v1932_v59 = vld [vmem:[#allocation10] sm:$0xff]  ;;  %v1424_v5 = vld [vmem:[%s2712_s8] sm:$0x1] }
 0x1ee   : > { %1474 = vmatpush.bf16.msra.mxu1 %v1938_v45  ;;  %v1326_v56 = vld [vmem:[#allocation4] sm:$0x1] }
 0x1ef   : > { %v1327_v57 = vpack.c.bf16 %v1326_v56, %v1326_v56 }
 0x1f1   : > { %1395 = vmatpush.bf16.msra.mxu0 %v1929_v46 }
 0x1f2   : > { %1475 = vmatpush.bf16.msra.mxu1 %v1937_v47 }
 0x1f5   : > { %1396 = vmatpush.bf16.msra.mxu0 %v1928_v48 }
 0x1f6   : > { %1476 = vmatpush.bf16.msra.mxu1 %v1936_v49 }
 0x1f9   : > { %1397 = vmatpush.bf16.msra.mxu0 %v1927_v50 }
 0x1fa   : > { %1477 = vmatpush.bf16.msra.mxu1 %v1935_v51 }
 0x1fd   : > { %1398 = vmatpush.bf16.msra.mxu0 %v1926_v52 }
 0x1fe   : > { %1478 = vmatpush.bf16.msra.mxu1 %v1934_v53 }
 0x201   : > { %1399 = vmatpush.bf16.msra.mxu0 %v1925_v54 }
 0x202   : > { %1479 = vmatpush.bf16.msra.mxu1 %v1933_v58 }
 0x205   : > { %1400 = vmatpush.bf16.msra.mxu0 %v1924_v55 }
 0x206   : > { %1480 = vmatpush.bf16.msra.mxu1 %v1932_v59 }
 0x208   : > { %1401 = vmatmul.bf16.vlgmr.msra.gmra.mxu0 %v1327_v57 }
 0x285   : > { %v1402_v61 = vpop.f32.mrf.mxu0 }
 0x286   : > { %v1403_v63 = vadd.f32 %v1402_v61, %v1344_v60 }
 0x288   : > { %v1406_v0 = vmax.f32 %v1403_v63, 0.0 }
 0x28a   : > { %v1407_v2 = vpack.c.bf16 %v1406_v0, %v1406_v0 }
 0x28c   : > { %1481 = vmatmul.bf16.vlgmr.msra.gmra.mxu1 %v1407_v2 }
 0x28d   : > { %v1404_v3 = vpop.f32.mrf.mxu0 }
 0x309   : > { %v1482_v8 = vpop.f32.mrf.mxu1 }
 0x30a   : > { %v1483_v9 = vadd.f32 %v1482_v8, %v1424_v5 }
 0x30c   : > { %1486 = vst [vmem:[#allocation11] sm:$0x1] %v1483_v9 }
 0x311   : > { %v1484_v10 = vpop.f32.mrf.mxu1 }
 0x312 PF: > { %s2730_s19 = sadd.s32 4294967295, %s2278_s14   ;;  %s2731_s5 = sld [smem:[#allocation18_spill]] }
 0x313   : > { %p2041_p6 = scmp.eq.s32.totalorder %s2730_s19, 2  ;;  %s2286_s18 = smov [#allocation11]  }
 0x314   : > { %s1493_s17 = sshll.u32 %s2286_s18, 4  ;;  %s1494_s17 = int_to_ptr.vmem [resolvable:$true] %s1493_s17 }
 0x318   : > { %s1495_s9 = sshll.u32 %s2731_s5, 4  ;;  %s1496_s9 = int_to_ptr.hbm [resolvable:$true] %s1495_s9 }
 0x319   : > { %2022 = dma.vmem_to_hbm [thread:$0]  (%p2041_p6), %s1494_s17, 16, %s1496_s9, [#allocation7]  }
 0x31a   : > { %2253 = dma.done.wait (%p2041_p6), [#allocation7], 16  }
 0x31b   : > { %2255 = vsyncadd (%p2041_p6), [#allocation7], 4294967280 }
 0x31c PF: > { %s24_s14 = sadd.s32 1, %s2278_s14   ;;  %s2732_s16 = sld [smem:[#allocation15_spill]] }
 0x31d   : > { %p21_p7 = scmp.ge.s32.totalorder %s24_s14, 5   ;;  %s2733_s30 = smov %s2262_s10 }
 0x31e   : > { %s2734_s10 = smov %s2266_s11  ;;  %s2735_s11 = smov %s2418_s26 }
 0x31f   : > { %s2736_s12 = smov %s2274_s13  ;;  %23 = sbr.rel (!%p21_p7) target bundleno = 10 (0xa), region = 121 }
 0x322   : > { %s2737_s13 = smov %s2732_s16 }
 0x324   :  { %1509 = vsyncpa [#allocation6], 1 }
 0x325   :  { %1511 = vsyncpa [#allocation6 + $0x1], 1 }
 0x326   :  { %1512 = vsyncpa [#allocation9], 1 }
 0x327   :  { %1513 = vsyncpa [#allocation7], 1 }
 0x328   :  { %1515 = vsyncpa [#allocation7 + $0x1], 1 }

</bundles_post_ra>
